<compile_context>
chip_gen: v7x
topology: tpu7x:2x2x1
jax: 0.10.0
libtpu: 0.0.40
codegen_flags: <defaults>
</compile_context>

<pallas_src>
import jax
import jax.numpy as jnp
from jax import lax
from jax.experimental import pallas as pl
from jax.experimental.pallas import tpu as pltpu


def myloss_kernel(pred_ref, lab_ref, out_ref, acc_ref):
    """One batch tile per grid step.

    pred_ref : (TB, C) logits, native dtype (upcast to f32 after load)
    lab_ref  : (TB, 1) int32 class labels
    out_ref  : (1, 1)  f32 total loss (written once, at the last step)
    acc_ref  : (R, C)  f32 persistent column accumulator (R = 8, or TB)
    """
    tb, c = pred_ref.shape
    acc_rows = acc_ref.shape[0]

    @pl.when(pl.program_id(0) == 0)
    def _():
        acc_ref[...] = jnp.zeros_like(acc_ref)

    x = pred_ref[...].astype(jnp.float32)                      # (TB, C)
    lab = lab_ref[...]                                         # (TB, 1) int32

    # Stable log-softmax:  -log softmax(x)[c] = lse(x) - x[c]
    m = jnp.max(x, axis=1, keepdims=True)                      # (TB, 1)  XLU
    e = jnp.exp(x - m)                                         # EUP
    lse = m + jnp.log(jnp.sum(e, axis=1, keepdims=True))       # (TB, 1)  XLU

    # Rebuild the one-hot mask in-register instead of streaming it from HBM.
    onehot = lax.broadcasted_iota(jnp.int32, (tb, c), 1) == lab    # (TB, C) VPU
    contrib = jnp.where(onehot, lse - x, 0.0)                      # (TB, C)

    # Bulk of the reduction on the VALU: fold sublane-blocks of rows into the
    # persistent (acc_rows, C) accumulator -- no per-step cross-lane reduce.
    if tb != acc_rows:
        contrib = jnp.sum(contrib.reshape(tb // acc_rows, acc_rows, c), axis=0)
    acc_ref[...] += contrib

    # Single cross-lane/sublane reduce + scalar store, once per kernel.
    @pl.when(pl.program_id(0) == pl.num_programs(0) - 1)
    def _():
        out_ref[...] = jnp.sum(acc_ref[...], keepdims=True)


def myloss_forward(pred, labels, *, tb=None):
    """loss = -sum_i log softmax(pred[i])[labels[i]]   (scalar f32).

    Identical to the PyTorch module's forward when `tar1` is the one-hot
    mask built from `labels`.
    """
    B, C = pred.shape
    if tb is None:
        tb = B if B <= 4096 else 2048        # single grid step for small B
    assert B % tb == 0, (B, tb)  # TODO(synk): pad ragged tails with a row mask
    acc_rows = 8 if tb % 8 == 0 else tb

    out = pl.pallas_call(
        myloss_kernel,
        out_shape=jax.ShapeDtypeStruct((1, 1), jnp.float32),
        grid_spec=pltpu.PrefetchScalarGridSpec(
            num_scalar_prefetch=0,
            grid=(B // tb,),
            in_specs=[pl.BlockSpec((tb, C), lambda i: (i, 0)),
                      pl.BlockSpec((tb, 1), lambda i: (i, 0))],
            out_specs=pl.BlockSpec((1, 1), lambda i: (0, 0)),
            scratch_shapes=[pltpu.VMEM((acc_rows, C), jnp.float32)],
        ),
        compiler_params=pltpu.CompilerParams(
            dimension_semantics=("arbitrary",)),   # scalar-reduction axis
    )(pred, labels.reshape(B, 1).astype(jnp.int32))
    return out[0, 0]


def myloss_forward_from_mask(pred, tar, *, tb=None):
    """Module-compatible entry taking the dense {0,1} mask `tar1`.

    Assumes exactly one selected entry per row (the canonical one-hot use);
    see the TODO(synk) above for general multi-hot masks.
    """
    labels = jnp.argmax(tar, axis=1)
    return myloss_forward(pred, labels, tb=tb)


def myloss_reference(pred, tar):
    """Pure-JAX mirror of the PyTorch forward."""
    p = jax.nn.softmax(pred.astype(jnp.float32), axis=1)
    return -jnp.sum(jnp.where(tar == 1, jnp.log(p), 0.0))


if __name__ == "__main__":
    # (batch, classes) logits with a one-hot target.  C = 128 keeps the lane
    # dimension dense; B = 16 fits one tile, so the primary call runs a single
    # grid step.
    B, C = 16, 128
    key = jax.random.PRNGKey(0)
    k0, k1 = jax.random.split(key)

    pred1 = jax.random.normal(k0, (B, C), jnp.float32) * 3.0
    labels = jax.random.randint(k1, (B,), 0, C)
    tar1 = jax.nn.one_hot(labels, C, dtype=jnp.float32)       # reference mask

    loss = myloss_forward(pred1, labels)
    loss = jax.block_until_ready(loss)

    ref = myloss_reference(pred1, tar1)
    assert loss.shape == (), loss.shape
    assert jnp.allclose(loss, ref, atol=1e-3, rtol=1e-4), (
        float(loss), float(ref))

    # Also exercise the module-compatible mask entry and the multi-step
    # accumulator path (tb=8 -> 2 grid steps).
    loss2 = myloss_forward_from_mask(pred1, tar1, tb=8)
    loss2 = jax.block_until_ready(loss2)
    assert jnp.allclose(loss2, ref, atol=1e-3, rtol=1e-4), (
        float(loss2), float(ref))

    print("KERNEL_OK")
</pallas_src>

<mosaic_0001>
module attributes {stable_mosaic.version = 11 : i64} {
  func.func @myloss_kernel(%arg0: i32, %arg1: memref<16x128xf32, #tpu.memory_space<vmem>>, %arg2: memref<16x1xi32, #tpu.memory_space<vmem>>, %arg3: memref<1x1xf32, #tpu.memory_space<vmem>>, %arg4: memref<8x128xf32, #tpu.memory_space<vmem>>) attributes {dimension_semantics = [#tpu.dimension_semantics<arbitrary>], iteration_bounds = array<i64: 1>, scalar_prefetch = 0 : i64, scratch_operands = 1 : i64, tpu.core_type = #tpu.core_type<tc>, window_params = [{transform_indices = @transform_0, window_bounds = array<i64: 16, 128>}, {transform_indices = @transform_1, window_bounds = array<i64: 16, 1>}, {pipeline_mode = #tpu.pipeline_mode<synchronous>, transform_indices = @transform_2, window_bounds = array<i64: 1, 1>}]} {
    %c0_i32 = arith.constant 0 : i32
    %0 = arith.cmpi eq, %arg0, %c0_i32 : i32
    %1 = arith.extui %0 : i1 to i32
    %c0_i32_0 = arith.constant 0 : i32
    %2 = arith.cmpi ne, %1, %c0_i32_0 : i32
    scf.if %2 {
      %cst_13 = arith.constant 0.000000e+00 : f32
      %29 = vector.broadcast %cst_13 : f32 to vector<8x128xf32>
      %c0_14 = arith.constant 0 : index
      %c0_15 = arith.constant 0 : index
      %30 = vector.load %arg4[%c0_14, %c0_15] : memref<8x128xf32, #tpu.memory_space<vmem>>, vector<8x128xf32>
      tpu.vector_store %arg4[%c0_14, %c0_15], %29 {strides = array<i32>} : memref<8x128xf32, #tpu.memory_space<vmem>>, vector<8x128xf32>,
    } else {
    }
    %c0 = arith.constant 0 : index
    %c0_1 = arith.constant 0 : index
    %3 = vector.load %arg1[%c0, %c0_1] : memref<16x128xf32, #tpu.memory_space<vmem>>, vector<16x128xf32>
    %c0_2 = arith.constant 0 : index
    %c0_3 = arith.constant 0 : index
    %4 = vector.load %arg2[%c0_2, %c0_3] : memref<16x1xi32, #tpu.memory_space<vmem>>, vector<16x1xi32>
    %cst = arith.constant dense<0xFF800000> : vector<16xf32>
    %5 = vector.multi_reduction <maximumf>, %3, %cst [1] : vector<16x128xf32> to vector<16xf32>
    %6 = vector.shape_cast %5 : vector<16xf32> to vector<16x1xf32>
    %7 = vector.broadcast %6 : vector<16x1xf32> to vector<16x128xf32>
    %8 = arith.subf %3, %7 : vector<16x128xf32>
    %9 = math.exp %8 : vector<16x128xf32>
    %cst_4 = arith.constant dense<0.000000e+00> : vector<16xf32>
    %10 = vector.multi_reduction <add>, %9, %cst_4 [1] : vector<16x128xf32> to vector<16xf32>
    %11 = vector.shape_cast %10 : vector<16xf32> to vector<16x1xf32>
    %12 = math.log %11 : vector<16x1xf32>
    %13 = arith.addf %6, %12 : vector<16x1xf32>
    %14 = tpu.iota {dimensions = array<i32: 1>} : vector<16x128xi32>
    %15 = vector.broadcast %4 : vector<16x1xi32> to vector<16x128xi32>
    %16 = arith.cmpi eq, %14, %15 : vector<16x128xi32>
    %17 = vector.broadcast %13 : vector<16x1xf32> to vector<16x128xf32>
    %18 = arith.subf %17, %3 : vector<16x128xf32>
    %cst_5 = arith.constant 0.000000e+00 : f32
    %19 = vector.broadcast %cst_5 : f32 to vector<16x128xf32>
    %20 = arith.select %16, %18, %19 : vector<16x128xi1>, vector<16x128xf32>
    %21 = vector.shape_cast %20 : vector<16x128xf32> to vector<2x8x128xf32>
    %cst_6 = arith.constant dense<0.000000e+00> : vector<8x128xf32>
    %22 = vector.multi_reduction <add>, %21, %cst_6 [0] : vector<2x8x128xf32> to vector<8x128xf32>
    %c0_7 = arith.constant 0 : index
    %c0_8 = arith.constant 0 : index
    %23 = vector.load %arg4[%c0_7, %c0_8] : memref<8x128xf32, #tpu.memory_space<vmem>>, vector<8x128xf32>
    %24 = arith.addf %23, %22 : vector<8x128xf32>
    %c0_9 = arith.constant 0 : index
    %c0_10 = arith.constant 0 : index
    %25 = vector.load %arg4[%c0_9, %c0_10] : memref<8x128xf32, #tpu.memory_space<vmem>>, vector<8x128xf32>
    tpu.vector_store %arg4[%c0_9, %c0_10], %24 {strides = array<i32>} : memref<8x128xf32, #tpu.memory_space<vmem>>, vector<8x128xf32>,
    %c0_i32_11 = arith.constant 0 : i32
    %26 = arith.cmpi eq, %arg0, %c0_i32_11 : i32
    %27 = arith.extui %26 : i1 to i32
    %c0_i32_12 = arith.constant 0 : i32
    %28 = arith.cmpi ne, %27, %c0_i32_12 : i32
    scf.if %28 {
      %c0_13 = arith.constant 0 : index
      %c0_14 = arith.constant 0 : index
      %29 = vector.load %arg4[%c0_13, %c0_14] : memref<8x128xf32, #tpu.memory_space<vmem>>, vector<8x128xf32>
      %30 = vector.shape_cast %29 : vector<8x128xf32> to vector<1x8x128xf32>
      %cst_15 = arith.constant dense<0.000000e+00> : vector<1xf32>
      %31 = vector.multi_reduction <add>, %30, %cst_15 [1, 2] : vector<1x8x128xf32> to vector<1xf32>
      %32 = vector.shape_cast %31 : vector<1xf32> to vector<1x1x1xf32>
      %33 = vector.extract %32[0, 0, 0] : f32 from vector<1x1x1xf32>
      %34 = vector.broadcast %33 : f32 to vector<1x1xf32>
      %c0_16 = arith.constant 0 : index
      %c0_17 = arith.constant 0 : index
      %35 = vector.load %arg3[%c0_16, %c0_17] : memref<1x1xf32, #tpu.memory_space<vmem>>, vector<1x1xf32>
      tpu.vector_store %arg3[%c0_16, %c0_17], %34 {strides = array<i32>} : memref<1x1xf32, #tpu.memory_space<vmem>>, vector<1x1xf32>,
    } else {
    }
    return
  }
  func.func @transform_0(%arg0: i32) -> (i32, i32) {
    %c0_i32 = arith.constant 0 : i32
    %c0_i32_0 = arith.constant 0 : i32
    return %arg0, %c0_i32 : i32, i32
  }
  func.func @transform_1(%arg0: i32) -> (i32, i32) {
    %c0_i32 = arith.constant 0 : i32
    %c0_i32_0 = arith.constant 0 : i32
    return %arg0, %c0_i32 : i32, i32
  }
  func.func @transform_2(%arg0: i32) -> (i32, i32) {
    %c0_i32 = arith.constant 0 : i32
    %c0_i32_0 = arith.constant 0 : i32
    %c0_i32_1 = arith.constant 0 : i32
    return %c0_i32, %c0_i32_0 : i32, i32
  }
}

</mosaic_0001>

<bundles_post_ra>
// kernel: tpu_custom_call.1
= control target key start
LH: loop header
LB: loop body
LE: loop exit
PB: predicated region body
PF: predicated region fallthrough
CT: control target
= control target key end

     0   :  { %s168_s0 = inlined_call_operand.vmem [shape: f32[16,128], index: 0, kind: input, shape index: {}]   ;;  %s169_s1 = inlined_call_operand.vmem [shape: s32[16,1], index: 1, kind: input, shape index: {}]   ;;  %s170_s2 = inlined_call_operand.hbm [shape: f32[1,1], index: 2, kind: output, shape index: {}]  }
   0x1   :  { %v17_v0 = vld [vmem:[%s168_s0] sm:$0xff] }
   0x2   :  { %7 = vsyncpa [#allocation4], 0  ;;  %21 = vmax.xlane.f32.xlu0 %v17_v0  ;;  %v18_v1 = vld [vmem:[%s168_s0 + $0x8] sm:$0xff]  ;;  %v19_v2 = vld [vmem:[%s169_s1] sm:$0xff]  ;;  %v127_v3 = vmov 0   ;;  %v41_v16 = vlaneseq  ;;  %vm73_vm2 = vcmask 0  }
   0x3   :  { %93 = vset.pattern.permute.xlu0 %v127_v3  ;;  %94 = vset.pattern.permute.xlu1 %v127_v3  ;;  %v20_v12 = vld [vmem:[%s169_s1 + $0x8] sm:$0xff]  ;;  %s128_s1 = smov [#allocation3]  }
   0x4   :  { %v42_v20 = vand.u32 127, %v41_v16  ;;  %s81_s16 = sshll.u32 %s128_s1, 4  ;;  %s82_s16 = int_to_ptr.vmem [resolvable:$true] %s81_s16 }
   0x5   :  { %s103_s18 = scalar_lea.vmem %s82_s16, 16  ;;  %s107_s19 = scalar_lea.vmem %s82_s16, 32 }
   0x6   :  { %23 = vmax.xlane.f32.xlu0 %v18_v1  ;;  %p104_p0 = scmp.ne.s32.totalorder %s82_s16, %s103_s18  ;;  %p108_p1 = scmp.lt.s32.totalorder %s82_s16, %s82_s16 }
   0x7   :  { %p109_p2 = scmp.lt.s32.totalorder %s107_s19, %s103_s18 }
   0x9   :  { %p110_p3 = por %p109_p2, %p108_p1 }
   0xb   :  { %p111_p4 = pnand %p110_p3, %p104_p0 }
  0x1c   :  { %44 = vperm.xlu0 %93, %v19_v2  }
  0x8f   :  { %v22_v4 = vpop.xlane.xlu0 %21 }
  0x90   :  { %v25_v5 = vsub.f32 %v17_v0, %v22_v4 }
  0x92   :  { %v27_v6 = vmul.f32 1.442695, %v25_v5 }
  0x93   :  { %v24_v7 = vpop.xlane.xlu0 %23 }
  0x94   :  { %v26_v8 = vsub.f32 %v18_v1, %v24_v7  ;;  %95 = vpow2.f32 %v27_v6 }
  0x96   :  { %v29_v9 = vmul.f32 1.442695, %v26_v8 }
  0x98   :  { %97 = vpow2.f32 %v29_v9 }
  0x9b   :  { %v45_v22 = vpop.permute.xlu0 %44 }
  0x9c   :  { %vm49_vm0 = vcmp.eq.s32.totalorder %v42_v20, %v45_v22 }
  0x9e   :  { %v96_v10 = vpop.eup %95 }
  0x9f   :  { %31 = vadd.xlane.f32.xlu1 %v96_v10 }
  0xa2   :  { %v98_v11 = vpop.eup %97 }
  0xa3   :  { %33 = vadd.xlane.f32.xlu1 %v98_v11 }
  0xb4   :  { %47 = vperm.xlu1 %94, %v20_v12  }
 0x12c   :  { %v32_v13 = vpop.xlane.xlu1 %31 }
 0x12d   :  { %99 = vlog2.f32 %v32_v13 }
 0x130   :  { %v34_v14 = vpop.xlane.xlu1 %33 }
 0x131   :  { %101 = vlog2.f32 %v34_v14 }
 0x134   :  { %v48_v23 = vpop.permute.xlu1 %47 }
 0x135   :  { %vm50_vm1 = vcmp.eq.s32.totalorder %v42_v20, %v48_v23 }
 0x137   :  { %v100_v15 = vpop.eup %99 }
 0x138   :  { %v36_v17 = vmul.f32 0.6931472, %v100_v15 }
 0x13a   :  { %v39_v18 = vadd.f32 %v36_v17, %v22_v4 }
 0x13b   :  { %v102_v19 = vpop.eup %101 }
 0x13c   :  { %v38_v21 = vmul.f32 0.6931472, %v102_v19  ;;  %v51_v25 = vsub.f32 %v39_v18, %v17_v0 }
 0x13e   :  { %v40_v24 = vadd.f32 %v38_v21, %v24_v7  ;;  %v53_v27 = vsel %vm49_vm0, %v51_v25, 0.0 }
 0x140   :  { %v52_v26 = vsub.f32 %v40_v24, %v18_v1 }
 0x142   :  { %v54_v28 = vsel %vm50_vm1, %v52_v26, 0.0 }
 0x143   :  { %v55_v29 = vadd.f32 %v54_v28, %v53_v27 }
 0x145   :  { %63 = vadd.xlane.f32.xlu1 %v55_v29 }
 0x1d2   :  { %v64_v30 = vpop.xlane.xlu1 %63 }
 0x1d3   :  { %v65_v31 = vrot.slane %v64_v30, 4 }
 0x1d5   :  { %v66_v32 = vadd.f32 %v65_v31, %v64_v30 }
 0x1d7   :  { %v67_v33 = vrot.slane %v66_v32, 2 }
 0x1d9   :  { %v68_v34 = vadd.f32 %v67_v33, %v66_v32 }
 0x1db   :  { %v69_v35 = vrot.slane %v68_v34, 1 }
 0x1dd   :  { %v70_v36 = vadd.f32 %v69_v35, %v68_v34 }
 0x1df   :  { %89 = vpush %v70_v36 }
 0x210   :  { %s90_s17 = spop %89 }
 0x211   :  { %v72_v37 = vstv %s90_s17 }
 0x212   :  { %74 = vst.msk [vmem:[#allocation3] sm:$0x1] %vm73_vm2, %v72_v37 }
 0x213   :  { %114 = shalt.err (!%p111_p4)
}
 0x214   :  { %s115_s22 = scalar_lea.hbm %s170_s2, 16 }
 0x215   :  { %p116_p5 = scmp.ne.s32.totalorder %s170_s2, %s115_s22  ;;  %p119_p6 = scmp.lt.u32.totalorder %s115_s22, %s170_s2 }
 0x217   :  { %p121_p7 = pnand %p119_p6, %p116_p5 }
 0x219   :  { %124 = shalt.err (!%p121_p7)
}
 0x21a   :  { %84 = dma.vmem_to_hbm [thread:$0]  %s82_s16, 16, %s170_s2, [#allocation4]  }
 0x21b   :  { %125 = dma.done.wait [#allocation4], 16  }
 0x21c   :  { %126 = vsyncadd [#allocation4], 4294967280 }
 0x21d   :  { %88 = vsyncpa [#allocation4], 1 }

</bundles_post_ra>
